<compile_context>
chip_gen: v7x
topology: tpu7x:2x2x1
jax: 0.10.0
libtpu: 0.0.40
codegen_flags: <defaults>
</compile_context>

<pallas_src>
import math

import jax
import jax.numpy as jnp
import numpy as np
from jax.experimental import pallas as pl
from jax.experimental.pallas import tpu as pltpu


# --------------------------------------------------------------------------
# Shared-range-reduction sin/cos (f32).
#
# 3-term Cody-Waite split of pi/2. HI has 8 mantissa bits and MID has 11, so
# k*HI and k*MID are exact in f32 for |k| < 2^13, i.e. |phase| <~ 1.2e4 rad
# (the module's phases reach ~6.3e3 at max_dist=20).  Absolute accuracy of
# the result is ~1e-6 for the f32 input value.
# --------------------------------------------------------------------------
_TWO_OVER_PI = 0.6366197723675814
_PIO2_HI = 1.5703125                 # 3216 / 2^11   (8 significant bits)
_PIO2_MID = 4.8375129699707031e-04   # 2029 / 2^22   (11 significant bits)
_PIO2_LO = 7.5497899548920000e-08    # pi/2 - HI - MID


def _sincos_shared(phase):
    """Return (sin(phase), cos(phase)) with one shared range reduction."""
    k = jnp.floor(phase * _TWO_OVER_PI + 0.5)          # round; exact products below
    r = ((phase - k * _PIO2_HI) - k * _PIO2_MID) - k * _PIO2_LO
    r2 = r * r
    # |r| <= pi/4 + eps: degree-7 sine / degree-8 cosine polynomials (Horner).
    s = r + r * r2 * (-1.0 / 6.0 + r2 * (1.0 / 120.0 + r2 * (-1.0 / 5040.0)))
    c = 1.0 + r2 * (-0.5 + r2 * (1.0 / 24.0
                                 + r2 * (-1.0 / 720.0 + r2 * (1.0 / 40320.0))))
    # Quadrant selection: phase = r + k*pi/2, q = k mod 4.
    q = k.astype(jnp.int32) & 3
    swap = (q & 1) == 1
    sin_v = jnp.where(swap, c, s)
    cos_v = jnp.where(swap, s, c)
    sin_v = jnp.where(q >= 2, -sin_v, sin_v)
    cos_v = jnp.where((q == 1) | (q == 2), -cos_v, cos_v)
    return sin_v, cos_v


def _fourier3d_kernel(dist_ref, freqs_ref, w_ref, b_ref, out_ref, sc_ref):
    d = dist_ref[...]                          # (1, tile)     f32, lane-dense
    phase = freqs_ref[...] * d                 # (K//2, tile)  rank-1 broadcast
    s, c = _sincos_shared(phase)               # shared range reduction (VPU)

    nh = freqs_ref.shape[0]                    # K // 2 (static, sublane-aligned here)
    # Write sin/cos directly into the two halves of the (K, tile) scratch so
    # the projection is one K-contraction matmul (no concat copy).
    sc_ref[0:nh, :] = s
    sc_ref[nh:, :] = c

    out = jnp.dot(w_ref[...], sc_ref[...],     # (H, K) @ (K, tile) -> (H, tile)
                  preferred_element_type=jnp.float32)
    out = out + b_ref[...]                     # (H, tile) + (H, 1) lane broadcast
    out_ref[...] = out.astype(out_ref.dtype)   # lane-dense store


def fourier3d_embed(dist, angular_freqs, weight, bias, *, max_tile=32768,
                    out_dtype=jnp.float32, channel_major=False):
    """Fourier3DEmbed forward.

    dist:          any shape, float.
    angular_freqs: (num_kernel // 2,)
    weight:        (num_heads, num_kernel)  -- native PyTorch nn.Linear layout.
    bias:          (num_heads,)
    Returns dist.shape + (num_heads,)  (or (num_heads,) + dist.shape when
    channel_major=True, which skips the wrapper-side relayout).
    """
    orig_shape = dist.shape
    num_half = angular_freqs.shape[0]
    num_heads, num_kernel = weight.shape
    assert num_kernel == 2 * num_half

    T = 1
    for s in orig_shape:
        T *= s
    T = max(T, 1)

    # Balanced blocking:
    #  * pad only to a multiple of 128 lanes (not a whole tile) -> <128 wasted
    #    columns per block instead of up to a full tile,
    #  * cap the tile at `max_tile` lanes so per-step pipeline overhead stays
    #    small while the working set remains a few MiB,
    #  * force >=2 blocks when possible so the "parallel" grid axis can be
    #    sharded across both v7x TensorCores.
    t128 = pl.cdiv(T, 128) * 128
    n_blocks = pl.cdiv(t128, max_tile)
    if n_blocks < 2 and t128 >= 256:
        n_blocks = 2
    tile = pl.cdiv(pl.cdiv(t128, n_blocks), 128) * 128
    n_blocks = pl.cdiv(t128, tile)
    Tpad = tile * n_blocks

    d_row = dist.reshape(1, T).astype(jnp.float32)           # rows on lanes
    if Tpad != T:
        d_row = jnp.pad(d_row, ((0, 0), (0, Tpad - T)))

    freqs_col = angular_freqs.reshape(num_half, 1).astype(jnp.float32)
    w = weight.astype(jnp.float32)                            # (H, K)
    b_col = bias.reshape(num_heads, 1).astype(jnp.float32)    # (H, 1)

    out_hm = pl.pallas_call(
        _fourier3d_kernel,
        out_shape=jax.ShapeDtypeStruct((num_heads, Tpad), out_dtype),
        grid_spec=pltpu.PrefetchScalarGridSpec(
            num_scalar_prefetch=0,
            grid=(n_blocks,),
            in_specs=[
                pl.BlockSpec((1, tile), lambda i: (0, i)),
                pl.BlockSpec((num_half, 1), lambda i: (0, 0)),
                pl.BlockSpec((num_heads, num_kernel), lambda i: (0, 0)),
                pl.BlockSpec((num_heads, 1), lambda i: (0, 0)),
            ],
            out_specs=pl.BlockSpec((num_heads, tile), lambda i: (0, i)),
            scratch_shapes=[pltpu.VMEM((num_kernel, tile), jnp.float32)],
        ),
        compiler_params=pltpu.CompilerParams(
            dimension_semantics=("parallel",),
            vmem_limit_bytes=64 * 1024 * 1024,
        ),
    )(d_row, freqs_col, w, b_col)

    if channel_major:
        # Consumer takes channel-major output: no relayout at all.
        return out_hm[:, :T].reshape(num_heads, *orig_shape)
    # Back to row-major (T, H) then the original leading shape.  This relayout
    # is a wrapper-side XLA transpose; fuse it into the consumer (or use
    # channel_major=True) to avoid re-reading/re-writing the result.
    out = out_hm[:, :T].T
    return out.reshape(*orig_shape, num_heads)


def _reference_f64(dist, angular_freqs, weight, bias):
    """Golden model: module semantics with the phase computed in f32 (as any
    f32 implementation must) but sin/cos and the projection in float64."""
    d = np.asarray(dist, np.float32)
    f = np.asarray(angular_freqs, np.float32)
    phase = (d[..., None] * f).astype(np.float64)
    sinusoids = np.concatenate([np.sin(phase), np.cos(phase)], axis=-1)
    return sinusoids @ np.asarray(weight, np.float64).T + np.asarray(bias, np.float64)


if __name__ == "__main__":
    # Module hyperparameters (small, consistent with the PyTorch module).
    num_heads = 8
    num_kernel = 32           # must be even
    min_dist, max_dist = 0.01, 20.0

    # Buffer: angular_freqs = 2*pi / exp(linspace(log(2*min), log(2*max), K//2))
    wave_lengths = jnp.exp(
        jnp.linspace(math.log(2 * min_dist), math.log(2 * max_dist), num_kernel // 2)
    )
    angular_freqs = (2.0 * math.pi / wave_lengths).astype(jnp.float32)   # (K//2,)

    # Deterministic parameter init for nn.Linear(num_kernel, num_heads),
    # kept in the native PyTorch layout: weight (H, K), bias (H,).
    key = jax.random.PRNGKey(0)
    k_d, k_w, k_b = jax.random.split(key, 3)
    bound = 1.0 / math.sqrt(num_kernel)
    weight = jax.random.uniform(
        k_w, (num_heads, num_kernel), jnp.float32, -bound, bound
    )
    bias = jax.random.uniform(k_b, (num_heads,), jnp.float32, -bound, bound)

    # Example input: pairwise-distance-like tensor, shape (B, N, N).
    B, N = 2, 16
    dist = jax.random.uniform(
        k_d, (B, N, N), jnp.float32, minval=min_dist, maxval=max_dist
    )

    out = fourier3d_embed(dist, angular_freqs, weight, bias)
    out = jax.block_until_ready(out)

    ref = _reference_f64(dist, angular_freqs, weight, bias)
    assert out.shape == (B, N, N, num_heads), out.shape
    err = float(np.max(np.abs(np.asarray(out, np.float64) - ref)))
    # The golden evaluates sin/cos of the same f32 phase in float64, so this
    # bounds the kernel's own error (range reduction + polynomial + f32 MXU
    # accumulation); observed error is ~1e-5, asserted with wide margin.
    assert err < 1e-3, err
    print("KERNEL_OK")
</pallas_src>

<mosaic_0001>
module attributes {stable_mosaic.version = 11 : i64} {
  func.func @_fourier3d_kernel(%arg0: i32, %arg1: memref<1x256xf32, #tpu.memory_space<vmem>>, %arg2: memref<16x1xf32, #tpu.memory_space<vmem>>, %arg3: memref<8x32xf32, #tpu.memory_space<vmem>>, %arg4: memref<8x1xf32, #tpu.memory_space<vmem>>, %arg5: memref<8x256xf32, #tpu.memory_space<vmem>>, %arg6: memref<32x256xf32, #tpu.memory_space<vmem>>) attributes {dimension_semantics = [#tpu.dimension_semantics<parallel>], iteration_bounds = array<i64: 2>, scalar_prefetch = 0 : i64, scratch_operands = 1 : i64, tpu.core_type = #tpu.core_type<tc>, window_params = [{transform_indices = @transform_0, window_bounds = array<i64: 1, 256>}, {pipeline_mode = #tpu.pipeline_mode<synchronous>, transform_indices = @transform_1, window_bounds = array<i64: 16, 1>}, {pipeline_mode = #tpu.pipeline_mode<synchronous>, transform_indices = @transform_2, window_bounds = array<i64: 8, 32>}, {pipeline_mode = #tpu.pipeline_mode<synchronous>, transform_indices = @transform_3, window_bounds = array<i64: 8, 1>}, {transform_indices = @transform_4, window_bounds = array<i64: 8, 256>}]} {
    %c0 = arith.constant 0 : index
    %c0_0 = arith.constant 0 : index
    %0 = vector.load %arg1[%c0, %c0_0] : memref<1x256xf32, #tpu.memory_space<vmem>>, vector<1x256xf32>
    %c0_1 = arith.constant 0 : index
    %c0_2 = arith.constant 0 : index
    %1 = vector.load %arg2[%c0_1, %c0_2] : memref<16x1xf32, #tpu.memory_space<vmem>>, vector<16x1xf32>
    %2 = vector.broadcast %1 : vector<16x1xf32> to vector<16x256xf32>
    %3 = vector.broadcast %0 : vector<1x256xf32> to vector<16x256xf32>
    %4 = arith.mulf %2, %3 : vector<16x256xf32>
    %cst = arith.constant 0.636619746 : f32
    %5 = vector.broadcast %cst : f32 to vector<16x256xf32>
    %6 = arith.mulf %4, %5 : vector<16x256xf32>
    %cst_3 = arith.constant 5.000000e-01 : f32
    %7 = vector.broadcast %cst_3 : f32 to vector<16x256xf32>
    %8 = arith.addf %6, %7 : vector<16x256xf32>
    %9 = math.floor %8 : vector<16x256xf32>
    %cst_4 = arith.constant 1.5703125 : f32
    %10 = vector.broadcast %cst_4 : f32 to vector<16x256xf32>
    %11 = arith.mulf %9, %10 : vector<16x256xf32>
    %12 = arith.subf %4, %11 : vector<16x256xf32>
    %cst_5 = arith.constant 4.83751297E-4 : f32
    %13 = vector.broadcast %cst_5 : f32 to vector<16x256xf32>
    %14 = arith.mulf %9, %13 : vector<16x256xf32>
    %15 = arith.subf %12, %14 : vector<16x256xf32>
    %cst_6 = arith.constant 7.549790e-08 : f32
    %16 = vector.broadcast %cst_6 : f32 to vector<16x256xf32>
    %17 = arith.mulf %9, %16 : vector<16x256xf32>
    %18 = arith.subf %15, %17 : vector<16x256xf32>
    %19 = arith.mulf %18, %18 : vector<16x256xf32>
    %20 = arith.mulf %18, %19 : vector<16x256xf32>
    %cst_7 = arith.constant -1.98412701E-4 : f32
    %21 = vector.broadcast %cst_7 : f32 to vector<16x256xf32>
    %22 = arith.mulf %19, %21 : vector<16x256xf32>
    %cst_8 = arith.constant 0.00833333377 : f32
    %23 = vector.broadcast %cst_8 : f32 to vector<16x256xf32>
    %24 = arith.addf %23, %22 : vector<16x256xf32>
    %25 = arith.mulf %19, %24 : vector<16x256xf32>
    %cst_9 = arith.constant -0.166666672 : f32
    %26 = vector.broadcast %cst_9 : f32 to vector<16x256xf32>
    %27 = arith.addf %26, %25 : vector<16x256xf32>
    %28 = arith.mulf %20, %27 : vector<16x256xf32>
    %29 = arith.addf %18, %28 : vector<16x256xf32>
    %cst_10 = arith.constant 2.48015876E-5 : f32
    %30 = vector.broadcast %cst_10 : f32 to vector<16x256xf32>
    %31 = arith.mulf %19, %30 : vector<16x256xf32>
    %cst_11 = arith.constant -0.00138888892 : f32
    %32 = vector.broadcast %cst_11 : f32 to vector<16x256xf32>
    %33 = arith.addf %32, %31 : vector<16x256xf32>
    %34 = arith.mulf %19, %33 : vector<16x256xf32>
    %cst_12 = arith.constant 0.0416666679 : f32
    %35 = vector.broadcast %cst_12 : f32 to vector<16x256xf32>
    %36 = arith.addf %35, %34 : vector<16x256xf32>
    %37 = arith.mulf %19, %36 : vector<16x256xf32>
    %cst_13 = arith.constant -5.000000e-01 : f32
    %38 = vector.broadcast %cst_13 : f32 to vector<16x256xf32>
    %39 = arith.addf %38, %37 : vector<16x256xf32>
    %40 = arith.mulf %19, %39 : vector<16x256xf32>
    %cst_14 = arith.constant 1.000000e+00 : f32
    %41 = vector.broadcast %cst_14 : f32 to vector<16x256xf32>
    %42 = arith.addf %41, %40 : vector<16x256xf32>
    %43 = arith.fptosi %9 : vector<16x256xf32> to vector<16x256xi32>
    %c3_i32 = arith.constant 3 : i32
    %44 = vector.broadcast %c3_i32 : i32 to vector<16x256xi32>
    %45 = arith.andi %43, %44 : vector<16x256xi32>
    %c1_i32 = arith.constant 1 : i32
    %46 = vector.broadcast %c1_i32 : i32 to vector<16x256xi32>
    %47 = arith.andi %45, %46 : vector<16x256xi32>
    %c1_i32_15 = arith.constant 1 : i32
    %48 = vector.broadcast %c1_i32_15 : i32 to vector<16x256xi32>
    %49 = arith.cmpi eq, %47, %48 : vector<16x256xi32>
    %50 = arith.select %49, %42, %29 : vector<16x256xi1>, vector<16x256xf32>
    %51 = arith.select %49, %29, %42 : vector<16x256xi1>, vector<16x256xf32>
    %c2_i32 = arith.constant 2 : i32
    %52 = vector.broadcast %c2_i32 : i32 to vector<16x256xi32>
    %53 = arith.cmpi sge, %45, %52 : vector<16x256xi32>
    %cst_16 = arith.constant 0.000000e+00 : f32
    %54 = vector.broadcast %cst_16 : f32 to vector<16x256xf32>
    %55 = arith.subf %54, %50 : vector<16x256xf32>
    %56 = arith.select %53, %55, %50 : vector<16x256xi1>, vector<16x256xf32>
    %c1_i32_17 = arith.constant 1 : i32
    %57 = vector.broadcast %c1_i32_17 : i32 to vector<16x256xi32>
    %58 = arith.cmpi eq, %45, %57 : vector<16x256xi32>
    %c2_i32_18 = arith.constant 2 : i32
    %59 = vector.broadcast %c2_i32_18 : i32 to vector<16x256xi32>
    %60 = arith.cmpi eq, %45, %59 : vector<16x256xi32>
    %61 = arith.ori %58, %60 : vector<16x256xi1>
    %cst_19 = arith.constant 0.000000e+00 : f32
    %62 = vector.broadcast %cst_19 : f32 to vector<16x256xf32>
    %63 = arith.subf %62, %51 : vector<16x256xf32>
    %64 = arith.select %61, %63, %51 : vector<16x256xi1>, vector<16x256xf32>
    %c0_20 = arith.constant 0 : index
    %c0_21 = arith.constant 0 : index
    %65 = vector.load %arg6[%c0_20, %c0_21] : memref<32x256xf32, #tpu.memory_space<vmem>>, vector<16x256xf32>
    tpu.vector_store %arg6[%c0_20, %c0_21], %56 {strides = array<i32>} : memref<32x256xf32, #tpu.memory_space<vmem>>, vector<16x256xf32>,
    %c16 = arith.constant 16 : index
    %c0_22 = arith.constant 0 : index
    %66 = vector.load %arg6[%c16, %c0_22] : memref<32x256xf32, #tpu.memory_space<vmem>>, vector<16x256xf32>
    tpu.vector_store %arg6[%c16, %c0_22], %64 {strides = array<i32>} : memref<32x256xf32, #tpu.memory_space<vmem>>, vector<16x256xf32>,
    %c0_23 = arith.constant 0 : index
    %c0_24 = arith.constant 0 : index
    %67 = vector.load %arg3[%c0_23, %c0_24] : memref<8x32xf32, #tpu.memory_space<vmem>>, vector<8x32xf32>
    %c0_25 = arith.constant 0 : index
    %c0_26 = arith.constant 0 : index
    %68 = vector.load %arg6[%c0_25, %c0_26] : memref<32x256xf32, #tpu.memory_space<vmem>>, vector<32x256xf32>
    %cst_27 = arith.constant dense<0.000000e+00> : vector<8x256xf32>
    %69 = tpu.matmul %67, %68, %cst_27 {dimension_numbers = #tpu.dot_dimension_numbers<[1], [0], [0], [1], [0, 0, 1, 1], [], []>} : vector<8x32xf32>, vector<32x256xf32>, vector<8x256xf32> -> vector<8x256xf32>
    %c0_28 = arith.constant 0 : index
    %c0_29 = arith.constant 0 : index
    %70 = vector.load %arg4[%c0_28, %c0_29] : memref<8x1xf32, #tpu.memory_space<vmem>>, vector<8x1xf32>
    %71 = vector.broadcast %70 : vector<8x1xf32> to vector<8x256xf32>
    %72 = arith.addf %69, %71 : vector<8x256xf32>
    %c0_30 = arith.constant 0 : index
    %c0_31 = arith.constant 0 : index
    %73 = vector.load %arg5[%c0_30, %c0_31] : memref<8x256xf32, #tpu.memory_space<vmem>>, vector<8x256xf32>
    tpu.vector_store %arg5[%c0_30, %c0_31], %72 {strides = array<i32>} : memref<8x256xf32, #tpu.memory_space<vmem>>, vector<8x256xf32>,
    return
  }
  func.func @transform_0(%arg0: i32) -> (i32, i32) {
    %c0_i32 = arith.constant 0 : i32
    %c0_i32_0 = arith.constant 0 : i32
    return %c0_i32, %arg0 : i32, i32
  }
  func.func @transform_1(%arg0: i32) -> (i32, i32) {
    %c0_i32 = arith.constant 0 : i32
    %c0_i32_0 = arith.constant 0 : i32
    %c0_i32_1 = arith.constant 0 : i32
    return %c0_i32, %c0_i32_0 : i32, i32
  }
  func.func @transform_2(%arg0: i32) -> (i32, i32) {
    %c0_i32 = arith.constant 0 : i32
    %c0_i32_0 = arith.constant 0 : i32
    %c0_i32_1 = arith.constant 0 : i32
    return %c0_i32, %c0_i32_0 : i32, i32
  }
  func.func @transform_3(%arg0: i32) -> (i32, i32) {
    %c0_i32 = arith.constant 0 : i32
    %c0_i32_0 = arith.constant 0 : i32
    %c0_i32_1 = arith.constant 0 : i32
    return %c0_i32, %c0_i32_0 : i32, i32
  }
  func.func @transform_4(%arg0: i32) -> (i32, i32) {
    %c0_i32 = arith.constant 0 : i32
    %c0_i32_0 = arith.constant 0 : i32
    return %c0_i32, %arg0 : i32, i32
  }
}

</mosaic_0001>

<bundles_post_ra>
// kernel: tpu_custom_call.1
= control target key start
LH: loop header
LB: loop body
LE: loop exit
PB: predicated region body
PF: predicated region fallthrough
CT: control target
= control target key end

     0   :  { %9 = vsyncpa [#allocation4], 0  ;;  %s1367_s0 = inlined_call_operand.hbm [shape: f32[1,512], index: 0, kind: input, shape index: {}]   ;;  %s1368_s1 = inlined_call_operand.hbm [shape: f32[16,1], index: 1, kind: input, shape index: {}]   ;;  %s1369_s2 = inlined_call_operand.hbm [shape: f32[8,32], index: 2, kind: input, shape index: {}]   ;;  %s1370_s3 = inlined_call_operand.hbm [shape: f32[8,1], index: 3, kind: input, shape index: {}]   ;;  %s1371_s4 = inlined_call_operand.hbm [shape: f32[8,512], index: 4, kind: output, shape index: {}]  }
   0x1   :  { %11 = vsyncpa [#allocation4 + $0x1], 0 }
   0x2   :  { %12 = vsyncpa [#allocation7], 0 }
   0x3   :  { %13 = vsyncpa [#allocation10], 0 }
   0x4   :  { %14 = vsyncpa [#allocation5], 0 }
   0x5   :  { %16 = vsyncpa [#allocation5 + $0x1], 0  ;;  %s1000_s15 = smov 0   ;;  %s1002_s16 = smov 0  }
   0x6   :  { %s1004_s17 = smov 0   ;;  %s1006_s18 = smov 0  }
   0x7 LB: > { %s1021_s19 = sadd.s32 4294967295, %s964_s18   ;;  %s654_s20 = sadd.s32 4294967294, %s964_s18   ;;  %s964_s18 = sphi %s1006_s18, %s1402_s18   ;;  %s960_s17 = sphi %s1004_s17, %s1401_s17   ;;  %s956_s16 = sphi %s1002_s16, %s1400_s16   ;;  %s952_s15 = sphi %s1000_s15, %s1399_s15  }
   0x8   : > { %p42_p0 = scmp.ne.s32.totalorder %s956_s16, %s952_s15  ;;  %p1372_p1 = scmp.eq.s32.totalorder %s1021_s19, 0 }
   0x9   : > { %p135_p3 = scmp.eq.s32.totalorder %s654_s20, 1  ;;  %p655_p5 = scmp.ge.s32.totalorder %s964_s18, 1 }
   0xa   : > { %p1030_p4 = por %p1372_p1, %p42_p0  ;;  %p142_p7 = scmp.lt.s32.totalorder %s964_s18, 3 }
   0xb   : > { %p1035_p6 = por %p135_p3, %p42_p0  ;;  %s966_s24 = smov [#allocation6]  }
   0xc   : > { %s1375_s21 = scalar_select %p1030_p4, 1, 0 }
   0xd   : > { %s1376_s22 = scalar_select %p1035_p6, 1, 0 }
   0xe   : > { %p1040_p8 = pnand %p655_p5, %p142_p7  ;;  %s154_s25 = sshll.u32 %s966_s24, 4  ;;  %s1044_s25 = int_to_ptr.vmem [resolvable:$true] %s154_s25 }
   0xf   : > { %s967_s27 = smov [#allocation8]   ;;  %s968_s29 = smov [#allocation9]  }
  0x10   : > { %s1377_s23 = scalar_select %p1040_p8, 1, 0 }
  0x11   : > { %p709_p9 = pneg %p1040_p8  ;;  %s168_s28 = sshll.u32 %s967_s27, 4  ;;  %s1055_s28 = int_to_ptr.vmem [resolvable:$true] %s168_s28 }
  0x12   : > { %s1057_s30 = sshll.u32 %s968_s29, 4  ;;  %s776_s7 = scalar_lea.hbm %s1368_s1, 256  ;;  %s180_s30 = int_to_ptr.vmem [resolvable:$true] %s1057_s30 }
  0x13   : > { %p1051_p11 = pnand %p709_p9, %p1372_p1  ;;  %p777_p12 = scmp.ne.s32.totalorder %s1368_s1, %s776_s7 }
  0x14   : > { %p783_p5 = scmp.lt.u32.totalorder %s776_s7, %s1368_s1 }
  0x15   : > { %p1067_p13 = pneg %p1051_p11 }
  0x17   : > { %p779_p0 = pnand %p1067_p13, %p777_p12 }
  0x19   : > { %p780_p3 = pneg %p779_p0 }
  0x1b   : > { %p785_p7 = pnand %p783_p5, %p780_p3 }
  0x1d   : > { %788 = shalt.err (!%p785_p7)
}
  0x1e   : > { %s789_s13 = scalar_lea.vmem %s1044_s25, 256  ;;  %p797_p2 = scmp.lt.s32.totalorder %s1044_s25, %s1044_s25 }
  0x1f   : > { %p790_p9 = scmp.ne.s32.totalorder %s1044_s25, %s789_s13  ;;  %p798_p6 = scmp.lt.s32.totalorder %s789_s13, %s789_s13 }
  0x21   : > { %p792_p10 = pnand %p790_p9, %p1067_p13  ;;  %p799_p12 = por %p798_p6, %p797_p2 }
  0x23   : > { %p793_p1 = pneg %p792_p10 }
  0x25   : > { %p800_p0 = pnand %p799_p12, %p793_p1 }
  0x27   : > { %803 = shalt.err (!%p800_p0)
}
  0x28   : > { %s969_s14 = smov 128   ;;  %s970_s20 = smov 8  }
  0x29   : > { %712 = dma.hbm_to_vmem [thread:$0]  (!%p1051_p11), %s1368_s1, 256, %s1044_s25, [#allocation7], %s969_s14, %s969_s14, %s970_s20  }
  0x2a   : > { %s804_s6 = scalar_lea.hbm %s1369_s2, 128 }
  0x2b   : > { %p805_p2 = scmp.ne.s32.totalorder %s1369_s2, %s804_s6  ;;  %p811_p10 = scmp.lt.u32.totalorder %s804_s6, %s1369_s2 }
  0x2d   : > { %p807_p1 = pnand %p805_p2, %p1067_p13 }
  0x2f   : > { %p808_p6 = pneg %p807_p1 }
  0x31   : > { %p813_p3 = pnand %p811_p10, %p808_p6 }
  0x33   : > { %816 = shalt.err (!%p813_p3)
}
  0x34   : > { %s817_s25 = scalar_lea.vmem %s1055_s28, 128  ;;  %p825_p12 = scmp.lt.s32.totalorder %s1055_s28, %s1055_s28 }
  0x35   : > { %p818_p5 = scmp.ne.s32.totalorder %s1055_s28, %s817_s25  ;;  %p826_p0 = scmp.lt.s32.totalorder %s817_s25, %s817_s25 }
  0x37   : > { %p820_p7 = pnand %p818_p5, %p1067_p13  ;;  %p827_p2 = por %p826_p0, %p825_p12 }
  0x39   : > { %p821_p9 = pneg %p820_p7 }
  0x3b   : > { %p828_p1 = pnand %p827_p2, %p821_p9 }
  0x3d   : > { %831 = shalt.err (!%p828_p1)
}
  0x3e   : > { %715 = dma.hbm_to_vmem [thread:$0]  (!%p1051_p11), %s1369_s2, 128, %s1055_s28, [#allocation7]  }
  0x3f   : > { %s832_s24 = scalar_lea.hbm %s1370_s3, 128 }
  0x40   : > { %p833_p6 = scmp.ne.s32.totalorder %s1370_s3, %s832_s24  ;;  %p839_p5 = scmp.lt.u32.totalorder %s832_s24, %s1370_s3 }
  0x42   : > { %p835_p10 = pnand %p833_p6, %p1067_p13 }
  0x44   : > { %p836_p3 = pneg %p835_p10 }
  0x46   : > { %p841_p7 = pnand %p839_p5, %p836_p3 }
  0x48   : > { %844 = shalt.err (!%p841_p7)
}
  0x49   : > { %s845_s7 = scalar_lea.vmem %s180_s30, 128  ;;  %p853_p2 = scmp.lt.s32.totalorder %s180_s30, %s180_s30 }
  0x4a   : > { %p846_p9 = scmp.ne.s32.totalorder %s180_s30, %s845_s7  ;;  %p854_p1 = scmp.lt.s32.totalorder %s845_s7, %s845_s7 }
  0x4c   : > { %p848_p12 = pnand %p846_p9, %p1067_p13  ;;  %p855_p4 = por %p854_p1, %p853_p2 }
  0x4e   : > { %p849_p0 = pneg %p848_p12 }
  0x50   : > { %p856_p8 = pnand %p855_p4, %p849_p0 }
  0x52   : > { %859 = shalt.err (!%p856_p8)
}
  0x53   : > { %718 = dma.hbm_to_vmem [thread:$0]  (!%p1051_p11), %s1370_s3, 128, %s180_s30, [#allocation10]  }
  0x54   : > { %s1131_s10 = sadd.s32 1, %s964_s18   ;;  %s29_s26 = sadd.s32 1, %s960_s17 }
  0x55   : > { %s26_s9 = ssub.s32 %s964_s18, %s1131_s10  ;;  %p36_p8 = scmp.ne.s32.totalorder %s960_s17, %s956_s16 }
  0x56   : > { %p27_p4 = scmp.eq.s32.totalorder %s26_s9, 0  ;;  %p37_p13 = scmp.eq.s32.totalorder %s964_s18, 0 }
  0x57   : > { %p730_p6 = scmp.lt.s32.totalorder %s964_s18, 2  ;;  %p1380_p3 = scmp.eq.s32.totalorder %s1021_s19, 1 }
  0x58   : > { %s1141_s11 = scalar_select %p27_p4, %s960_s17, %s29_s26  }
  0x59   : > { %p38_p10 = por %p37_p13, %p36_p8  ;;  %p1145_p5 = por %p1380_p3, %p36_p8 }
  0x5a   : > { %s190_s12 = sand.u32 1, %s960_s17   ;;  %s675_s13 = sshll.u32 %s964_s18, 5 }
  0x5b   : > { %s660_s30 = sshll.u32 %s190_s12, 1  ;;  %s1154_s24 = scalar_lea.hbm %s1367_s0, %s675_s13 }
  0x5c   : > { %s194_s27 = scalar_lea.vmem [#allocation3], %s660_s30  ;;  %p1156_p11 = pnand %p730_p6, %p38_p10 }
  0x5d   : > { %s202_s29 = sshll.u32 %s194_s27, 4  ;;  %s191_s6 = scalar_lea.sflag [#allocation4], %s190_s12  ;;  %s1160_s29 = int_to_ptr.vmem [resolvable:$true] %s202_s29 }
  0x5e   : > { %s860_s7 = scalar_lea.hbm %s1154_s24, 32  ;;  %p862_p9 = pneg %p1156_p11 }
  0x5f   : > { %p861_p7 = scmp.ne.s32.totalorder %s1154_s24, %s860_s7  ;;  %s865_s9 = scalar_lea.hbm %s1367_s0, 64 }
  0x60   : > { %p866_p2 = scmp.lt.u32.totalorder %s1154_s24, %s1367_s0  ;;  %p867_p1 = scmp.lt.u32.totalorder %s865_s9, %s860_s7 }
  0x61   : > { %p863_p12 = pnand %p862_p9, %p861_p7  ;;  %p869_p8 = scmp.lt.u32.totalorder %s860_s7, %s1154_s24 }
  0x62   : > { %p868_p4 = por %p867_p1, %p866_p2 }
  0x63   : > { %p864_p0 = pneg %p863_p12 }
  0x64   : > { %p870_p13 = por %p869_p8, %p868_p4 }
  0x66   : > { %p871_p6 = pnand %p870_p13, %p864_p0 }
  0x68   : > { %874 = shalt.err (!%p871_p6)
}
  0x69   : > { %s875_s12 = scalar_lea.vmem %s1160_s29, 32  ;;  %s971_s30 = smov [#allocation3]  }
  0x6a   : > { %p876_p10 = scmp.ne.s32.totalorder %s1160_s29, %s875_s12  ;;  %s880_s14 = sshll.u32 %s971_s30, 4  ;;  %s881_s14 = int_to_ptr.vmem [resolvable:$false] %s880_s14 }
  0x6b   : > { %s882_s20 = scalar_lea.vmem %s881_s14, 64  ;;  %p883_p12 = scmp.lt.s32.totalorder %s1160_s29, %s881_s14 }
  0x6c   : > { %p878_p3 = pnand %p876_p10, %p862_p9  ;;  %p884_p2 = scmp.lt.s32.totalorder %s882_s20, %s875_s12 }
  0x6e   : > { %p879_p7 = pneg %p878_p3  ;;  %p885_p1 = por %p884_p2, %p883_p12 }
  0x70   : > { %p886_p4 = pnand %p885_p1, %p879_p7 }
  0x72   : > { %889 = shalt.err (!%p886_p4)
}
  0x73   : > { %722 = dma.hbm_to_vmem [thread:$0]  (!%p1156_p11), %s1154_s24, 32, %s1160_s29, %s191_s6  }
  0x74   : > { %p1383_p0 = scmp.ne.s32.totalorder %s1377_s23, 0 }
  0x75   : > { %s1190_s27 = sand.u32 (!%p1383_p0), 1, %s956_s16   ;;  %p1384_p9 = scmp.ne.s32.totalorder (!%p1383_p0), %s1375_s21, 0 }
  0x76   : > { %211 = sbr.rel (%p1383_p0) target bundleno = 545 (0x221), region = 36  ;;  %s664_s7 = sshll.u32 (!%p1383_p0), %s1190_s27, 1 }
  0x77   : > { %s214_s28 = scalar_lea.sflag (!%p1383_p0), [#allocation4], %s1190_s27  ;;  %s217_s8 = scalar_lea.vmem (!%p1383_p0), [#allocation3], %s664_s7 }
  0x7d   : > { %935 = dma.done.wait (%p1384_p9), %s214_s28, 32  }
  0x7e   : > { %937 = vsyncadd (%p1384_p9), %s214_s28, 4294967264  ;;  %p1385_p8 = scmp.eq.s32.totalorder %s1021_s19, 0 }
  0x80   : > { %939 = dma.done.wait (%p1385_p8), [#allocation7], 384   ;;  %p1386_p11 = pmov %p1385_p8 }
  0x81   : > { %p1387_p13 = pmov %p1385_p8 }
  0x82   : > { %941 = vsyncadd (%p1386_p11), [#allocation7], 4294966912 }
  0x83   : > { %943 = dma.done.wait (%p1387_p13), [#allocation10], 128   ;;  %p1388_p6 = pmov %p1385_p8 }
  0x84   : > { %v972_v0 = vmov 0   ;;  %v257_v1 = vld [vmem:[#allocation6] sm:$0xff]  ;;  %v258_v2 = vld [vmem:[#allocation6 + $0x8] sm:$0xff]  ;;  %v973_v3 = vmov 0.0   ;;  %v457_v4 = vld [vmem:[#allocation9] sm:$0xff]  ;;  %v270_v5 = vlaneseq  ;;  %s668_s21 = sshll.u32 %s1190_s27, 4 }
  0x85   : > { %945 = vsyncadd (%p1388_p6), [#allocation10], 4294967168  ;;  %774 = vset.pattern.permute.xlu0 %v972_v0  ;;  %775 = vset.pattern.permute.xlu1 %v972_v0  ;;  %v256_v9 = vld [vmem:[%s217_s8] sm:$0x3]  ;;  %s676_s23 = sshll.u32 %s1021_s19, 8  ;;  %s253_s24 = scalar_lea.vmem [#allocation11], %s668_s21 }
  0x86   : > { %261 = vperm.xlu0 %774, %v257_v1   ;;  %531 = vmatprep.mubr.f32.mxu0 %v973_v3  ;;  %v271_v6 = vshrl.u32 %v270_v5, 7  ;;  %s555_s29 = sshll.u32 %s253_s24, 4  ;;  %s1323_s9 = scalar_lea.hbm %s1371_s4, %s676_s23  ;;  %s1325_s29 = int_to_ptr.vmem [resolvable:$true] %s555_s29 }
  0x87   : > { %460 = vperm.xlu1 %775, %v457_v4   ;;  %s541_s26 = scalar_lea.sflag [#allocation5], %s1190_s27  ;;  %s890_s19 = scalar_lea.vmem %s1325_s29, 256 }
  0x88   : > { %v272_v7 = vsub.s32 0, %v271_v6  ;;  %v276_v8 = vsub.s32 1, %v271_v6  ;;  %p891_p10 = scmp.ne.s32.totalorder %s1325_s29, %s890_s19  ;;  %s974_s13 = smov [#allocation11]  }
  0x89   : > { %s894_s12 = sshll.u32 %s974_s13, 4  ;;  %s895_s12 = int_to_ptr.vmem [resolvable:$false] %s894_s12 }
  0x8a   : > { %266 = vperm.xlu0 %774, %v258_v2   ;;  %v273_v10 = vrot.slane %v256_v9, %v272_v7  ;;  %v277_v11 = vrot.slane %v256_v9, %v276_v8  ;;  %p892_p3 = pnand %p891_p10, %p1145_p5  ;;  %s896_s30 = scalar_lea.vmem %s895_s12, 512 }
  0x8b   : > { %p897_p12 = scmp.lt.s32.totalorder %s1325_s29, %s895_s12  ;;  %p898_p2 = scmp.lt.s32.totalorder %s896_s30, %s890_s19 }
  0x8c   : > { %p893_p7 = pneg %p892_p3 }
  0x8d   : > { %p899_p1 = por %p898_p2, %p897_p12 }
  0x8f   : > { %p900_p4 = pnand %p899_p1, %p893_p7 }
 0x105   : > { %v262_v12 = vpop.permute.xlu0 %261 }
 0x106   : > { %v280_v13 = vmul.f32 %v273_v10, %v262_v12  ;;  %v281_v14 = vmul.f32 %v277_v11, %v262_v12 }
 0x108   : > { %v284_v15 = vmul.f32 0.63661975, %v280_v13  ;;  %v285_v16 = vmul.f32 0.63661975, %v281_v14 }
 0x109   : > { %v267_v17 = vpop.permute.xlu0 %266 }
 0x10a   : > { %v288_v18 = vadd.f32 0.5, %v284_v15  ;;  %v289_v19 = vadd.f32 0.5, %v285_v16  ;;  %v282_v20 = vmul.f32 %v273_v10, %v267_v17  ;;  %v283_v21 = vmul.f32 %v277_v11, %v267_v17 }
 0x10c   : > { %v292_v22 = vfloor.f32 %v288_v18  ;;  %v293_v23 = vfloor.f32 %v289_v19  ;;  %v286_v24 = vmul.f32 0.63661975, %v282_v20  ;;  %v287_v25 = vmul.f32 0.63661975, %v283_v21 }
 0x10e   : > { %v296_v26 = vmul.f32 1.5703125, %v292_v22  ;;  %v297_v27 = vmul.f32 1.5703125, %v293_v23  ;;  %v304_v28 = vmul.f32 0.0004837513, %v292_v22  ;;  %v305_v29 = vmul.f32 0.0004837513, %v293_v23 }
 0x10f   : > { %v290_v30 = vadd.f32 0.5, %v286_v24  ;;  %v685_v33 = vtrunc.f32 %v292_v22  ;;  %v291_v34 = vadd.f32 0.5, %v287_v25  ;;  %v312_v35 = vmul.f32 7.54979e-08, %v292_v22 }
 0x110   : > { %v300_v31 = vsub.f32 %v280_v13, %v296_v26  ;;  %v301_v32 = vsub.f32 %v281_v14, %v297_v27  ;;  %v687_v37 = vtrunc.f32 %v293_v23  ;;  %v313_v40 = vmul.f32 7.54979e-08, %v293_v23 }
 0x111   : > { %v294_v36 = vfloor.f32 %v290_v30  ;;  %v295_v41 = vfloor.f32 %v291_v34  ;;  %v686_v47 = vcvt.f32.s32 %v685_v33 }
 0x112   : > { %v308_v38 = vsub.f32 %v300_v31, %v304_v28  ;;  %v309_v39 = vsub.f32 %v301_v32, %v305_v29  ;;  %v688_v51 = vcvt.f32.s32 %v687_v37 }
 0x113   : > { %v298_v42 = vmul.f32 1.5703125, %v294_v36  ;;  %v689_v43 = vtrunc.f32 %v294_v36  ;;  %v299_v46 = vmul.f32 1.5703125, %v295_v41  ;;  %v306_v49 = vmul.f32 0.0004837513, %v294_v36 }
 0x114   : > { %v1206_v44 = vsub.f32 %v308_v38, %v312_v35  ;;  %v1208_v45 = vsub.f32 %v309_v39, %v313_v40  ;;  %v691_v50 = vtrunc.f32 %v295_v41  ;;  %v307_v55 = vmul.f32 0.0004837513, %v295_v41 }
 0x115   : > { %v302_v48 = vsub.f32 %v282_v20, %v298_v42  ;;  %v303_v54 = vsub.f32 %v283_v21, %v299_v46  ;;  %v314_v57 = vmul.f32 7.54979e-08, %v294_v36  ;;  %v690_v58 = vcvt.f32.s32 %v689_v43 }
 0x116   : > { %v1212_v52 = vmul.f32 %v1206_v44, %v1206_v44  ;;  %v321_v53 = vmul.f32 %v1208_v45, %v1208_v45  ;;  %v692_v59 = vcvt.f32.s32 %v691_v50  ;;  %v315_v61 = vmul.f32 7.54979e-08, %v295_v41 }
 0x117   : > { %v310_v56 = vsub.f32 %v302_v48, %v306_v49  ;;  %v311_v60 = vsub.f32 %v303_v54, %v307_v55  ;;  %v1218_v1 = vand.u32 3, %v688_v51  ;;  %v1229_v7 = vand.u32 3, %v690_v58 }
 0x118   : > { %v329_v62 = vmul.f32 -0.0001984127, %v321_v53  ;;  %v353_v0 = vmul.f32 2.4801588e-05, %v321_v53  ;;  %v1220_v2 = vand.u32 3, %v692_v59  ;;  %v1231_v9 = vand.u32 3, %v686_v47 }
 0x119   : > { %v1216_v63 = vsub.f32 %v310_v56, %v314_v57  ;;  %v1222_v3 = vsub.f32 %v311_v60, %v315_v61  ;;  %v328_v5 = vmul.f32 -0.0001984127, %v1212_v52  ;;  %v324_v10 = vmul.f32 %v1212_v52, %v1206_v44 }
 0x11a   : > { %v333_v4 = vadd.f32 0.008333334, %v329_v62  ;;  %v357_v8 = vadd.f32 -0.0013888889, %v353_v0  ;;  %v393_v15 = vand.u32 1, %v1218_v1  ;;  %v395_v16 = vand.u32 1, %v1220_v2 }
 0x11b   : > { %v1227_v6 = vmul.f32 %v1216_v63, %v1216_v63  ;;  %v323_v11 = vmul.f32 %v1222_v3, %v1222_v3  ;;  %v332_v13 = vadd.f32 0.008333334, %v328_v5  ;;  %v325_v18 = vmul.f32 %v321_v53, %v1208_v45 }
 0x11c   : > { %v337_v12 = vmul.f32 %v333_v4, %v321_v53  ;;  %v361_v14 = vmul.f32 %v357_v8, %v321_v53  ;;  %v352_v25 = vmul.f32 2.4801588e-05, %v1212_v52  ;;  %vm409_vm0 = vcmp.ge.s32.totalorder %v1218_v1, 2 }
 0x11d   : > { %v330_v17 = vmul.f32 -0.0001984127, %v1227_v6  ;;  %v331_v19 = vmul.f32 -0.0001984127, %v323_v11  ;;  %v355_v21 = vmul.f32 2.4801588e-05, %v323_v11  ;;  %v336_v24 = vmul.f32 %v332_v13, %v1212_v52 }
 0x11e   : > { %v341_v20 = vadd.f32 -0.16666667, %v337_v12  ;;  %v365_v22 = vadd.f32 0.041666668, %v361_v14  ;;  %v326_v26 = vmul.f32 %v1227_v6, %v1216_v63  ;;  %v354_v29 = vmul.f32 2.4801588e-05, %v1227_v6 }
 0x11f   : > { %v334_v23 = vadd.f32 0.008333334, %v330_v17  ;;  %v335_v27 = vadd.f32 0.008333334, %v331_v19  ;;  %v359_v28 = vadd.f32 -0.0013888889, %v355_v21  ;;  %v327_v34 = vmul.f32 %v323_v11, %v1222_v3 }
 0x120   : > { %v369_v30 = vmul.f32 %v365_v22, %v321_v53  ;;  %v340_v32 = vadd.f32 -0.16666667, %v336_v24  ;;  %v356_v33 = vadd.f32 -0.0013888889, %v352_v25  ;;  %v358_v37 = vadd.f32 -0.0013888889, %v354_v29 }
 0x121   : > { %v338_v31 = vmul.f32 %v334_v23, %v1227_v6  ;;  %v339_v35 = vmul.f32 %v335_v27, %v323_v11  ;;  %v363_v36 = vmul.f32 %v359_v28, %v323_v11  ;;  %v345_v38 = vmul.f32 %v341_v20, %v325_v18 }
 0x122   : > { %v373_v39 = vadd.f32 -0.5, %v369_v30  ;;  %v360_v41 = vmul.f32 %v356_v33, %v1212_v52  ;;  %v344_v46 = vmul.f32 %v340_v32, %v324_v10  ;;  %v362_v47 = vmul.f32 %v358_v37, %v1227_v6 }
 0x123   : > { %v342_v40 = vadd.f32 -0.16666667, %v338_v31  ;;  %v343_v42 = vadd.f32 -0.16666667, %v339_v35  ;;  %v367_v43 = vadd.f32 0.041666668, %v363_v36  ;;  %v349_v58 = vadd.f32 %v345_v38, %v1208_v45 }
 0x124   : > { %v377_v48 = vmul.f32 %v373_v39, %v321_v53  ;;  %v364_v50 = vadd.f32 0.041666668, %v360_v41  ;;  %v392_v51 = vand.u32 1, %v1231_v9  ;;  %vm1252_vm1 = vcmp.eq.s32.totalorder %v393_v15, 1  ;;  %v448_v39 = vld [vmem:[#allocation8] sm:$0xff] }
 0x125   : > { %v346_v49 = vmul.f32 %v342_v40, %v326_v26  ;;  %v347_v54 = vmul.f32 %v343_v42, %v327_v34  ;;  %v371_v55 = vmul.f32 %v367_v43, %v323_v11  ;;  %v366_v57 = vadd.f32 0.041666668, %v362_v47 }
 0x126   : > { %v381_v59 = vadd.f32 1.0, %v377_v48  ;;  %v368_v60 = vmul.f32 %v364_v50, %v1212_v52  ;;  %v394_v61 = vand.u32 1, %v1229_v7  ;;  %vm1259_vm2 = vcmp.eq.s32.totalorder %v395_v16, 1 }
 0x127   : > { %v375_v62 = vadd.f32 -0.5, %v371_v55  ;;  %vm411_vm3 = vcmp.ge.s32.totalorder %v1220_v2, 2  ;;  %v348_v0 = vadd.f32 %v344_v46, %v1206_v44  ;;  %v370_v4 = vmul.f32 %v366_v57, %v1227_v6 }
 0x128   : > { %v401_v5 = vsel %vm1252_vm1, %v381_v59, %v349_v58  ;;  %v350_v45 = vadd.f32 %v346_v49, %v1216_v63  ;;  %v372_v8 = vadd.f32 -0.5, %v368_v60  ;;  %vm1269_vm4 = vcmp.eq.s32.totalorder %v392_v51, 1 }
 0x129   : > { %v351_v12 = vadd.f32 %v347_v54, %v1222_v3  ;;  %v379_v13 = vmul.f32 %v375_v62, %v323_v11  ;;  %v413_v14 = vsub.f32 0.0, %v401_v5  ;;  %v374_v15 = vadd.f32 -0.5, %v370_v4 }
 0x12a   : > { %v376_v16 = vmul.f32 %v372_v8, %v1212_v52  ;;  %vm1275_vm5 = vcmp.eq.s32.totalorder %v394_v61, 1  ;;  %vm408_vm6 = vcmp.ge.s32.totalorder %v1231_v9, 2  ;;  %vm410_vm7 = vcmp.ge.s32.totalorder %v1229_v7, 2 }
 0x12b   : > { %v383_v63 = vadd.f32 1.0, %v379_v13  ;;  %v378_v17 = vmul.f32 %v374_v15, %v1227_v6  ;;  %v405_v18 = vsel %vm1252_vm1, %v349_v58, %v381_v59  ;;  %vm421_vm8 = vcmp.eq.s32.totalorder %v1218_v1, 1 }
 0x12c   : > { %v417_v3 = vsel %vm409_vm0, %v413_v14, %v401_v5  ;;  %v380_v52 = vadd.f32 1.0, %v376_v16  ;;  %vm423_vm9 = vcmp.eq.s32.totalorder %v1220_v2, 1  ;;  %vm425_vm10 = vcmp.eq.s32.totalorder %v1218_v1, 2  ;;  %v461_v1 = vpop.permute.xlu1 %460 }
 0x12d   : > { %v403_v11 = vsel %vm1259_vm2, %v383_v63, %v351_v12  ;;  %v382_v19 = vadd.f32 1.0, %v378_v17  ;;  %v407_v6 = vsel %vm1259_vm2, %v351_v12, %v383_v63  ;;  %vm427_vm11 = vcmp.eq.s32.totalorder %v1220_v2, 2  ;;  %vm429_vm1 = vmor %vm421_vm8, %vm425_vm10 }
 0x12e   : > { %v415_v20 = vsub.f32 0.0, %v403_v11  ;;  %v400_v21 = vsel %vm1269_vm4, %v380_v52, %v348_v0  ;;  %v433_v22 = vsub.f32 0.0, %v405_v18  ;;  %v435_v23 = vsub.f32 0.0, %v407_v6  ;;  %vm431_vm12 = vmor %vm423_vm9, %vm427_vm11 }
 0x12f   : > { %v402_v24 = vsel %vm1275_vm5, %v382_v19, %v350_v45  ;;  %v412_v25 = vsub.f32 0.0, %v400_v21  ;;  %v404_v26 = vsel %vm1269_vm4, %v348_v0, %v380_v52  ;;  %v406_v27 = vsel %vm1275_vm5, %v350_v45, %v382_v19 }
 0x130   : > { %v419_v28 = vsel %vm411_vm3, %v415_v20, %v403_v11  ;;  %v414_v29 = vsub.f32 0.0, %v402_v24  ;;  %vm422_vm13 = vcmp.eq.s32.totalorder %v1229_v7, 1  ;;  %vm426_vm14 = vcmp.eq.s32.totalorder %v1229_v7, 2 }
 0x131   : > { %v677_v30 = vpack.c.bf16 %v419_v28, %v417_v3  ;;  %v439_v31 = vsel %vm431_vm12, %v435_v23, %v407_v6  ;;  %vm420_vm15 = vcmp.eq.s32.totalorder %v1231_v9, 1  ;;  %vm424_vm0 = vcmp.eq.s32.totalorder %v1231_v9, 2  ;;  %vm430_vm2 = vmor %vm422_vm13, %vm426_vm14 }
 0x132   : > { %v416_v32 = vsel %vm408_vm6, %v412_v25, %v400_v21  ;;  %v418_v33 = vsel %vm410_vm7, %v414_v29, %v402_v24  ;;  %v432_v2 = vsub.f32 0.0, %v404_v26  ;;  %v434_v34 = vsub.f32 0.0, %v406_v27  ;;  %vm428_vm3 = vmor %vm420_vm15, %vm424_vm0 }
 0x133   : > { %678 = vmatprep.subr.bf16.mxu0 %v677_v30  ;;  %v679_v35 = vpack.c.bf16 %v418_v33, %v416_v32  ;;  %v437_v36 = vsel %vm429_vm1, %v433_v22, %v405_v18  ;;  %vm463_vm4 = vcmask 261120  }
 0x134   : > { %v681_v37 = vpack.c.bf16 %v439_v31, %v437_v36  ;;  %v438_v38 = vsel %vm430_vm2, %v434_v34, %v406_v27  ;;  %v436_v7 = vsel %vm428_vm3, %v432_v2, %v404_v26 }
 0x135   : > { %680 = vmatpush1.bf16.msra.mxu0 %v679_v35  ;;  %v683_v9 = vpack.c.bf16 %v438_v38, %v436_v7 }
 0x136   : > { %682 = vmatprep.subr.bf16.mxu0 %v681_v37 }
 0x139   : > { %684 = vmatpush1.bf16.msra.mxu0 %v683_v9 }
 0x13c   : > { %669 = vmatmul.mubr.msk.f32.vlgmr.msra.gmra.mrb[0].mxu0 %vm463_vm4, %v448_v39 }
 0x20f   : > { %v533_v40 = vpop.f32.mrb[0].mxu0 }
 0x210   : > { %v534_v41 = vadd.f32 %v533_v40, %v461_v1  ;;  %v535_v42 = vpop.f32.mrb[1].mxu0 }
 0x211   : > { %v536_v43 = vadd.f32 %v535_v42, %v461_v1 }
 0x212   : > { %538 = vst [vmem:[%s253_s24] sm:$0xff] %v534_v41 }
 0x213   : > { %539 = vst [vmem:[%s253_s24 + $0x8] sm:$0xff] %v536_v43 }
 0x214   : > { %903 = shalt.err (!%p900_p4)
}
 0x215   : > { %s904_s14 = scalar_lea.hbm %s1323_s9, 256  ;;  %s908_s7 = scalar_lea.hbm %s1371_s4, 512 }
 0x216   : > { %p905_p0 = scmp.ne.s32.totalorder %s1323_s9, %s904_s14  ;;  %p909_p11 = scmp.lt.u32.totalorder %s1323_s9, %s1371_s4 }
 0x217   : > { %p910_p13 = scmp.lt.u32.totalorder %s908_s7, %s904_s14  ;;  %p912_p10 = scmp.lt.u32.totalorder %s904_s14, %s1323_s9 }
 0x218   : > { %p906_p9 = pnand %p905_p0, %p1145_p5 }
 0x219   : > { %p911_p6 = por %p910_p13, %p909_p11 }
 0x21a   : > { %p907_p8 = pneg %p906_p9 }
 0x21b   : > { %p913_p3 = por %p912_p10, %p911_p6 }
 0x21d   : > { %p914_p7 = pnand %p913_p3, %p907_p8 }
 0x21f   : > { %917 = shalt.err (!%p914_p7)
}
 0x220   : > { %707 = dma.vmem_to_hbm [thread:$0]  (%p1145_p5), %s1325_s29, 256, %s1323_s9, %s541_s26  }
 0x221 PF: > { %s567_s21 = sand.u32 1, %s952_s15   ;;  %p1397_p12 = scmp.ne.s32.totalorder %s1376_s22, 0 }
 0x222   : > { %p1398_p2 = scmp.ge.s32.totalorder %s964_s18, 2  ;;  %s568_s23 = scalar_lea.sflag [#allocation5], %s567_s21 }
 0x224   : > { %p724_p1 = pnand %p1398_p2, %p1397_p12 }
 0x226   : > { %947 = dma.done.wait (!%p724_p1), %s568_s23, 256  }
 0x227   : > { %949 = vsyncadd (!%p724_p1), %s568_s23, 4294967040  ;;  %p19_p4 = scmp.ge.s32.totalorder %s1131_s10, 4   ;;  %s1399_s15 = smov %s956_s16 }
 0x228   : > { %s1400_s16 = smov %s960_s17  ;;  %s1401_s17 = smov %s1141_s11 }
 0x229   : > { %s1402_s18 = smov %s1131_s10  ;;  %21 = sbr.rel (!%p19_p4) target bundleno = 7 (0x7), region = 93 }
 0x230   :  { %573 = vsyncpa [#allocation4], 1 }
 0x231   :  { %575 = vsyncpa [#allocation4 + $0x1], 1 }
 0x232   :  { %576 = vsyncpa [#allocation7], 1 }
 0x233   :  { %577 = vsyncpa [#allocation10], 1 }
 0x234   :  { %578 = vsyncpa [#allocation5], 1 }
 0x235   :  { %580 = vsyncpa [#allocation5 + $0x1], 1 }

</bundles_post_ra>
